<compile_context>
chip_gen: v7x
topology: tpu7x:2x2x1
jax: 0.10.0
libtpu: 0.0.40
codegen_flags: <defaults>
</compile_context>

<pallas_src>
import functools
import math

import jax
import jax.numpy as jnp
from jax import lax
from jax.experimental import pallas as pl
from jax.experimental.pallas import tpu as pltpu


def _round_up(x, m):
    return (x + m - 1) // m * m


def _pick_tn(out, max_tn):
    """Largest lane-dense (multiple-of-128) divisor of `out` that is <= max_tn."""
    if out <= max_tn:
        return out
    if out % 128 == 0:
        for t in range((max_tn // 128) * 128, 0, -128):
            if out % t == 0:
                return t
    return out  # rare: large, non-lane-aligned OUT -> full extent (still legal)


# --------------------------- kernel 1: QKV projection ---------------------------

def _linear_kernel(x_ref, w_ref, b_ref, o_ref, acc_ref):
    # x_ref: (tm, tk) native dtype, w_ref: (tk, tn) bf16, b_ref: (1, tn) f32,
    # o_ref: (tm, tn), acc_ref: (tm, tn) f32 accumulator resident across the K axis.
    k = pl.program_id(2)

    @pl.when(k == 0)
    def _():
        acc_ref[...] = jnp.zeros_like(acc_ref)

    # Cast the activation tile to bf16 *inside* the kernel (no separate XLA cast pass).
    acc_ref[...] += jnp.dot(x_ref[...].astype(jnp.bfloat16), w_ref[...],
                            preferred_element_type=jnp.float32)

    @pl.when(k == pl.num_programs(2) - 1)
    def _():
        o_ref[...] = (acc_ref[...] + b_ref[...].astype(jnp.float32)).astype(o_ref.dtype)


def qkv_projection(x2, w_t, bias2, *, out_dtype, max_tm=256, max_tn=512, max_tk=512):
    """x2: (M, D); w_t: (D, OUT) bf16; bias2: (1, OUT) f32 -> (M, OUT) = x2 @ w_t + bias."""
    M, D = x2.shape
    OUT = w_t.shape[1]

    # Row tile: bf16-packed sublane granularity (16); pad rows instead of asserting.
    tm = min(max_tm, _round_up(M, 16))
    Mp = _round_up(M, tm)
    if Mp != M:
        x2 = jnp.pad(x2, ((0, Mp - M), (0, 0)))

    # Lane-dense output tile.
    tn = _pick_tn(OUT, max_tn)

    # K (reduction) tile keeps double-buffered VMEM bounded for large D
    # (v5e 16 MiB scoped default, v7x 64 MiB physical); zero-padding K is exact.
    if D <= max_tk:
        tk, Kp = D, D
    else:
        tk = max_tk
        Kp = _round_up(D, tk)
        if Kp != D:
            x2 = jnp.pad(x2, ((0, 0), (0, Kp - D)))
            w_t = jnp.pad(w_t, ((0, Kp - D), (0, 0)))

    grid = (Mp // tm, OUT // tn, Kp // tk)

    out = pl.pallas_call(
        _linear_kernel,
        out_shape=jax.ShapeDtypeStruct((Mp, OUT), out_dtype),
        grid_spec=pltpu.PrefetchScalarGridSpec(
            num_scalar_prefetch=0,
            grid=grid,
            in_specs=[
                pl.BlockSpec((tm, tk), lambda i, j, k: (i, k)),   # activations (native dtype)
                pl.BlockSpec((tk, tn), lambda i, j, k: (k, j)),   # pre-transposed weight
                pl.BlockSpec((1, tn), lambda i, j, k: (0, j)),    # bias
            ],
            out_specs=pl.BlockSpec((tm, tn), lambda i, j, k: (i, j)),
            scratch_shapes=[pltpu.VMEM((tm, tn), jnp.float32)],
        ),
        compiler_params=pltpu.CompilerParams(
            dimension_semantics=("parallel", "parallel", "arbitrary")),
    )(x2, w_t, bias2)

    return out[:M] if Mp != M else out


# -------------------- kernel 2: fused head-split + attention + concat --------------------

def _mhsa_kernel(qvk_ref, o_ref, *, head_num, dh, scale):
    # qvk_ref: (N, 3D) for one batch (leading dim squeezed); chunk order is q, v, k.
    # o_ref:   (N, D)  -- one lane-dense slab per batch, heads concatenated in place.
    D = head_num * dh
    outs = []
    for h in range(head_num):                                  # static, unrolled over heads
        q = qvk_ref[:, h * dh:(h + 1) * dh]                    # (N, dh)  chunk 0 -> q
        v = qvk_ref[:, D + h * dh:D + (h + 1) * dh]            # (N, dh)  chunk 1 -> v
        k = qvk_ref[:, 2 * D + h * dh:2 * D + (h + 1) * dh]    # (N, dh)  chunk 2 -> k

        s = lax.dot_general(q, k, (((1,), (1,)), ((), ())),
                            preferred_element_type=jnp.float32) * scale   # (N, N) f32
        m = jnp.max(s, axis=-1, keepdims=True)
        p = jnp.exp(s - m)                                                 # unnormalized
        l = jnp.sum(p, axis=-1, keepdims=True)
        o = jnp.dot(p.astype(v.dtype), v, preferred_element_type=jnp.float32)  # (N, dh)
        # Normalize once per row after the PV matmul; approx reciprocal runs on the EUP.
        outs.append(o * pl.reciprocal(l, approx=True))
    # Single full-width store (lane-dense) instead of per-head masked stores.
    o_ref[...] = jnp.concatenate(outs, axis=-1).astype(o_ref.dtype)


def mhsa_attention(qvk, head_num, dh, *, out_dtype):
    """qvk: (B, N, 3D) -> (B, N, D). Non-causal, no dropout; heads read in place."""
    B, N, D3 = qvk.shape
    D = D3 // 3
    scale = 1.0 / math.sqrt(dh)

    # TODO(synk): for long sequences, tile the KV axis with an online-softmax
    # (flash-style) m/l/acc accumulator; the full (N, N) f32 score block breaks
    # around N~2k on v7x's 64 MiB VMEM.  At small N one block per batch is optimal.
    return pl.pallas_call(
        functools.partial(_mhsa_kernel, head_num=head_num, dh=dh, scale=scale),
        out_shape=jax.ShapeDtypeStruct((B, N, D), out_dtype),
        grid_spec=pltpu.PrefetchScalarGridSpec(
            num_scalar_prefetch=0,
            grid=(B,),
            in_specs=[pl.BlockSpec((pl.Squeezed(), N, D3), lambda b: (b, 0, 0))],
            out_specs=pl.BlockSpec((pl.Squeezed(), N, D), lambda b: (b, 0, 0)),
        ),
        compiler_params=pltpu.CompilerParams(
            dimension_semantics=("parallel",)),
    )(qvk)


# ------------------------------- module forward --------------------------------

def multi_head_self_attention(x, w_qvk, b_qvk, head_num, *, compute_dtype=jnp.bfloat16):
    """x: (B, N, D); w_qvk: (3D, D); b_qvk: (3D,)  ->  (B, N, D) in x.dtype."""
    B, N, D = x.shape
    assert D % head_num == 0, 'dim must be divided by head_num'
    dh = D // head_num

    # One-time, weight-only preprocessing (amortized across all tokens / calls):
    # transpose to (D, 3D) so the kernel dot is MXU-native, and cast to bf16.
    w_t = jnp.transpose(w_qvk).astype(compute_dtype)              # (D, 3D)
    b2 = b_qvk.astype(jnp.float32).reshape(1, 3 * D)

    # 1) fused QKV projection on the flattened (B*N, D) view; x is cast in-kernel.
    qvk = qkv_projection(x.reshape(B * N, D), w_t, b2, out_dtype=compute_dtype)
    qvk = qvk.reshape(B, N, 3 * D)                                # free reshape

    # 2+3+4) head split (PyTorch chunk order q, v, k), full attention
    # (causal=False, dropout=0.0 -> identity) and head concat all happen inside
    # one kernel per batch -- no HBM transposes, lane-dense (B, N, D) output.
    # TODO(synk): dropout with p>0 not implemented (module forward uses the 0.0 default).
    return mhsa_attention(qvk, head_num, dh, out_dtype=x.dtype)


# ------------------------------------ demo --------------------------------------

if __name__ == "__main__":
    # Small shapes consistent with the module: batch=2, seq=8, dim=64, 2 heads (dh=32).
    B, N, D, H = 2, 8, 64, 2

    key = jax.random.PRNGKey(0)
    kx, kw, kb = jax.random.split(key, 3)

    x = jax.random.normal(kx, (B, N, D), dtype=jnp.float32)
    # Deterministic "nn.Linear(dim, 3*dim)"-style params (synthetic, not a checkpoint).
    bound = 1.0 / math.sqrt(D)
    w_qvk = jax.random.uniform(kw, (3 * D, D), jnp.float32, -bound, bound)
    b_qvk = jax.random.uniform(kb, (3 * D,), jnp.float32, -bound, bound)

    out = multi_head_self_attention(x, w_qvk, b_qvk, H, compute_dtype=jnp.bfloat16)
    out = jax.block_until_ready(out)

    # Pure-JAX f32 reference reproducing the PyTorch module exactly.
    def reference(x, w, b, h):
        Bs, Ns, Ds = x.shape
        dhs = Ds // h
        qvk = x @ w.T + b
        qp, vp, kp = jnp.split(qvk, 3, axis=-1)          # chunk order: q, v, k
        def heads(t):
            return t.reshape(Bs, Ns, h, dhs).transpose(0, 2, 1, 3)
        q, v, k = heads(qp), heads(vp), heads(kp)
        s = jnp.einsum('bhqd,bhkd->bhqk', q, k) / math.sqrt(dhs)
        p = jax.nn.softmax(s, axis=-1)
        o = jnp.einsum('bhqk,bhkd->bhqd', p, v)
        return o.transpose(0, 2, 1, 3).reshape(Bs, Ns, Ds)

    ref = reference(x, w_qvk, b_qvk, H)
    assert out.shape == (B, N, D)
    # bf16 MXU inputs with f32 accumulation + approx reciprocal -> compare against the
    # f32 reference with a correspondingly loose tolerance.
    err = float(jnp.max(jnp.abs(out.astype(jnp.float32) - ref)))
    assert jnp.allclose(out.astype(jnp.float32), ref, atol=2e-2, rtol=2e-2), err

    print("KERNEL_OK")
</pallas_src>

<mosaic_0001>
module attributes {stable_mosaic.version = 11 : i64} {
  func.func @_linear_kernel(%arg0: i32, %arg1: i32, %arg2: i32, %arg3: memref<16x64xf32, #tpu.memory_space<vmem>>, %arg4: memref<64x192xbf16, #tpu.memory_space<vmem>>, %arg5: memref<1x192xf32, #tpu.memory_space<vmem>>, %arg6: memref<16x192xbf16, #tpu.memory_space<vmem>>, %arg7: memref<16x192xf32, #tpu.memory_space<vmem>>) attributes {dimension_semantics = [#tpu.dimension_semantics<parallel>, #tpu.dimension_semantics<parallel>, #tpu.dimension_semantics<arbitrary>], iteration_bounds = array<i64: 1, 1, 1>, scalar_prefetch = 0 : i64, scratch_operands = 1 : i64, tpu.core_type = #tpu.core_type<tc>, window_params = [{transform_indices = @transform_0, window_bounds = array<i64: 16, 64>}, {transform_indices = @transform_1, window_bounds = array<i64: 64, 192>}, {transform_indices = @transform_2, window_bounds = array<i64: 1, 192>}, {transform_indices = @transform_3, window_bounds = array<i64: 16, 192>}]} {
    %c0_i32 = arith.constant 0 : i32
    %0 = arith.cmpi eq, %arg2, %c0_i32 : i32
    %1 = arith.extui %0 : i1 to i32
    %c0_i32_0 = arith.constant 0 : i32
    %2 = arith.cmpi ne, %1, %c0_i32_0 : i32
    scf.if %2 {
      %cst_10 = arith.constant 0.000000e+00 : f32
      %13 = vector.broadcast %cst_10 : f32 to vector<16x192xf32>
      %c0_11 = arith.constant 0 : index
      %c0_12 = arith.constant 0 : index
      %14 = vector.load %arg7[%c0_11, %c0_12] : memref<16x192xf32, #tpu.memory_space<vmem>>, vector<16x192xf32>
      tpu.vector_store %arg7[%c0_11, %c0_12], %13 {strides = array<i32>} : memref<16x192xf32, #tpu.memory_space<vmem>>, vector<16x192xf32>,
    } else {
    }
    %c0 = arith.constant 0 : index
    %c0_1 = arith.constant 0 : index
    %3 = vector.load %arg7[%c0, %c0_1] : memref<16x192xf32, #tpu.memory_space<vmem>>, vector<16x192xf32>
    %c0_2 = arith.constant 0 : index
    %c0_3 = arith.constant 0 : index
    %4 = vector.load %arg3[%c0_2, %c0_3] : memref<16x64xf32, #tpu.memory_space<vmem>>, vector<16x64xf32>
    %5 = arith.truncf %4 : vector<16x64xf32> to vector<16x64xbf16>
    %c0_4 = arith.constant 0 : index
    %c0_5 = arith.constant 0 : index
    %6 = vector.load %arg4[%c0_4, %c0_5] : memref<64x192xbf16, #tpu.memory_space<vmem>>, vector<64x192xbf16>
    %cst = arith.constant dense<0.000000e+00> : vector<16x192xf32>
    %7 = tpu.matmul %5, %6, %cst {dimension_numbers = #tpu.dot_dimension_numbers<[1], [0], [0], [1], [0, 0, 1, 1], [], []>} : vector<16x64xbf16>, vector<64x192xbf16>, vector<16x192xf32> -> vector<16x192xf32>
    %8 = arith.addf %3, %7 : vector<16x192xf32>
    %c0_6 = arith.constant 0 : index
    %c0_7 = arith.constant 0 : index
    %9 = vector.load %arg7[%c0_6, %c0_7] : memref<16x192xf32, #tpu.memory_space<vmem>>, vector<16x192xf32>
    tpu.vector_store %arg7[%c0_6, %c0_7], %8 {strides = array<i32>} : memref<16x192xf32, #tpu.memory_space<vmem>>, vector<16x192xf32>,
    %c0_i32_8 = arith.constant 0 : i32
    %10 = arith.cmpi eq, %arg2, %c0_i32_8 : i32
    %11 = arith.extui %10 : i1 to i32
    %c0_i32_9 = arith.constant 0 : i32
    %12 = arith.cmpi ne, %11, %c0_i32_9 : i32
    scf.if %12 {
      %c0_10 = arith.constant 0 : index
      %c0_11 = arith.constant 0 : index
      %13 = vector.load %arg7[%c0_10, %c0_11] : memref<16x192xf32, #tpu.memory_space<vmem>>, vector<16x192xf32>
      %c0_12 = arith.constant 0 : index
      %c0_13 = arith.constant 0 : index
      %14 = vector.load %arg5[%c0_12, %c0_13] : memref<1x192xf32, #tpu.memory_space<vmem>>, vector<1x192xf32>
      %15 = vector.broadcast %14 : vector<1x192xf32> to vector<16x192xf32>
      %16 = arith.addf %13, %15 : vector<16x192xf32>
      %17 = arith.truncf %16 : vector<16x192xf32> to vector<16x192xbf16>
      %c0_14 = arith.constant 0 : index
      %c0_15 = arith.constant 0 : index
      %18 = vector.load %arg6[%c0_14, %c0_15] : memref<16x192xbf16, #tpu.memory_space<vmem>>, vector<16x192xbf16>
      tpu.vector_store %arg6[%c0_14, %c0_15], %17 {strides = array<i32>} : memref<16x192xbf16, #tpu.memory_space<vmem>>, vector<16x192xbf16>,
    } else {
    }
    return
  }
  func.func @transform_0(%arg0: i32, %arg1: i32, %arg2: i32) -> (i32, i32) {
    %c0_i32 = arith.constant 0 : i32
    return %arg0, %arg2 : i32, i32
  }
  func.func @transform_1(%arg0: i32, %arg1: i32, %arg2: i32) -> (i32, i32) {
    %c0_i32 = arith.constant 0 : i32
    return %arg2, %arg1 : i32, i32
  }
  func.func @transform_2(%arg0: i32, %arg1: i32, %arg2: i32) -> (i32, i32) {
    %c0_i32 = arith.constant 0 : i32
    %c0_i32_0 = arith.constant 0 : i32
    return %c0_i32, %arg1 : i32, i32
  }
  func.func @transform_3(%arg0: i32, %arg1: i32, %arg2: i32) -> (i32, i32) {
    %c0_i32 = arith.constant 0 : i32
    return %arg0, %arg1 : i32, i32
  }
}

</mosaic_0001>

<bundles_post_ra>
// kernel: tpu_custom_call.1
= control target key start
LH: loop header
LB: loop body
LE: loop exit
PB: predicated region body
PF: predicated region fallthrough
CT: control target
= control target key end

     0   :  { %8 = vsyncpa [#allocation4], 0  ;;  %s405_s0 = inlined_call_operand.hbm [shape: f32[16,64], index: 0, kind: input, shape index: {}]   ;;  %s406_s1 = inlined_call_operand.hbm [shape: bf16[64,192], index: 1, kind: input, shape index: {}]   ;;  %s407_s2 = inlined_call_operand.vmem [shape: f32[1,192], index: 2, kind: input, shape index: {}]   ;;  %s408_s3 = inlined_call_operand.hbm [shape: bf16[16,192], index: 3, kind: output, shape index: {}]  }
   0x1   :  { %9 = vsyncpa [#allocation7], 0 }
   0x2   :  { %10 = vsyncpa [#allocation5], 0  ;;  %s325_s12 = smov [#allocation3]   ;;  %s253_s16 = scalar_lea.hbm %s405_s0, 256 }
   0x3   :  { %s16_s13 = sshll.u32 %s325_s12, 4  ;;  %p254_p0 = scmp.ne.s32.totalorder %s405_s0, %s253_s16  ;;  %s17_s13 = int_to_ptr.vmem [resolvable:$true] %s16_s13 }
   0x4   :  { %p257_p1 = scmp.lt.u32.totalorder %s253_s16, %s405_s0 }
   0x6   :  { %p259_p2 = pnand %p257_p1, %p254_p0 }
   0x8   :  { %262 = shalt.err (!%p259_p2)
}
   0x9   :  { %s263_s21 = scalar_lea.vmem %s17_s13, 256  ;;  %p268_p4 = scmp.lt.s32.totalorder %s17_s13, %s17_s13 }
   0xa   :  { %p264_p3 = scmp.ne.s32.totalorder %s17_s13, %s263_s21  ;;  %p269_p5 = scmp.lt.s32.totalorder %s263_s21, %s263_s21 }
   0xc   :  { %p270_p6 = por %p269_p5, %p268_p4 }
   0xe   :  { %p271_p7 = pnand %p270_p6, %p264_p3 }
  0x10   :  { %274 = shalt.err (!%p271_p7)
}
  0x11   :  { %s326_s22 = smov 128   ;;  %s327_s23 = smov 8  }
  0x12   :  { %22 = dma.hbm_to_vmem [thread:$0]  %s405_s0, 256, %s17_s13, [#allocation4], %s326_s22, %s326_s22, %s327_s23  }
  0x13   :  { %s328_s26 = smov [#allocation6]   ;;  %s275_s30 = scalar_lea.hbm %s406_s1, 1024 }
  0x14   :  { %s28_s27 = sshll.u32 %s328_s26, 4  ;;  %p276_p8 = scmp.ne.s32.totalorder %s406_s1, %s275_s30  ;;  %s29_s27 = int_to_ptr.vmem [resolvable:$true] %s28_s27 }
  0x15   :  { %p279_p9 = scmp.lt.u32.totalorder %s275_s30, %s406_s1 }
  0x17   :  { %p281_p10 = pnand %p279_p9, %p276_p8 }
  0x19   :  { %284 = shalt.err (!%p281_p10)
}
  0x1a   :  { %s285_s8 = scalar_lea.vmem %s29_s27, 1024  ;;  %p290_p12 = scmp.lt.s32.totalorder %s29_s27, %s29_s27 }
  0x1b   :  { %p286_p11 = scmp.ne.s32.totalorder %s29_s27, %s285_s8  ;;  %p291_p13 = scmp.lt.s32.totalorder %s285_s8, %s285_s8 }
  0x1d   :  { %p292_p0 = por %p291_p13, %p290_p12 }
  0x1f   :  { %p293_p1 = pnand %p292_p0, %p286_p11 }
  0x21   :  { %296 = shalt.err (!%p293_p1)
}
  0x22   :  { %34 = dma.hbm_to_vmem [thread:$0]  %s406_s1, 1024, %s29_s27, [#allocation7], %s326_s22, %s326_s22, %s327_s23  }
  0x23   :  { %319 = dma.done.wait [#allocation4], 256  }
  0x24   :  { %320 = vsyncadd [#allocation4], 4294967040 }
  0x25   :  { %321 = dma.done.wait [#allocation7], 1024  }
  0x26   :  { %322 = vsyncadd [#allocation7], 4294966272  ;;  %vm49_vm0 = vcmask 523264   ;;  %v329_v0 = vmov 0   ;;  %v330_v1 = vmov 0.0   ;;  %v57_v10 = vld [vmem:[#allocation3] sm:$0xff]  ;;  %v172_v13 = vlaneseq }
  0x27   :  { %144 = vmatprep.mubr.bf16.mxu0 %v329_v0  ;;  %50 = vst.msk [vmem:[#allocation2 + $0x8] sm:$0xff] %vm49_vm0, %v330_v1  ;;  %52 = vst.msk [vmem:[#allocation2 + $0x18] sm:$0xff] %vm49_vm0, %v330_v1  ;;  %v241_v2 = vld [vmem:[#allocation6 + $0x4] ss:$8 sps:$4 sm:$0xff]   ;;  %v243_v3 = vld [vmem:[#allocation6] ss:$8 sps:$4 sm:$0xff]  }
  0x28   :  { %112 = vmatprep.subr.bf16.mxu0 %v241_v2  ;;  %v244_v4 = vld [vmem:[#allocation6 + $0x14] ss:$8 sps:$4 sm:$0xff]   ;;  %v246_v5 = vld [vmem:[#allocation6 + $0x10] ss:$8 sps:$4 sm:$0xff]   ;;  %v247_v6 = vld [vmem:[#allocation6 + $0x24] ss:$8 sps:$4 sm:$0xff]  }
  0x29   :  { %113 = vmatpush1.bf16.msra.mxu0 %v243_v3  ;;  %v249_v7 = vld [vmem:[#allocation6 + $0x20] ss:$8 sps:$4 sm:$0xff]   ;;  %v250_v8 = vld [vmem:[#allocation6 + $0x34] ss:$8 sps:$4 sm:$0xff]   ;;  %v252_v9 = vld [vmem:[#allocation6 + $0x30] ss:$8 sps:$4 sm:$0xff]  }
  0x2a   :  { %114 = vmatprep.subr.bf16.mxu0 %v244_v4  ;;  %v58_v11 = vld [vmem:[#allocation3 + $0x8] sm:$0xff]  ;;  %v173_v16 = vshrl.u32 %v172_v13, 7  ;;  %v170_v25 = vld [vmem:[%s407_s2] sm:$0x3]  ;;  %vm198_vm1 = vcmask 1043456   ;;  %vm199_vm2 = vcmask 523268  }
  0x2b   :  { %v59_v12 = vpack.c.bf16 %v58_v11, %v57_v10  ;;  %vm200_vm3 = vmor %vm199_vm2, %vm198_vm1  ;;  %s331_s11 = smov [#allocation8]  }
  0x2c   :  { %v174_v23 = vsub.s32 0, %v173_v16  ;;  %v178_v24 = vsub.s32 1, %v173_v16  ;;  %s208_s12 = sshll.u32 %s331_s11, 4  ;;  %s209_s12 = int_to_ptr.vmem [resolvable:$true] %s208_s12 }
  0x2d   :  { %115 = vmatpush1.bf16.msra.mxu0 %v246_v5  ;;  %s297_s2 = scalar_lea.vmem %s209_s12, 256  ;;  %p302_p3 = scmp.lt.s32.totalorder %s209_s12, %s209_s12 }
  0x2e   :  { %116 = vmatprep.subr.bf16.mxu0 %v247_v6  ;;  %v54_v14 = vld [vmem:[#allocation2 + $0x8] sm:$0xff]  ;;  %v56_v18 = vld [vmem:[#allocation2 + $0x18] sm:$0xff]  ;;  %v175_v26 = vrot.slane %v170_v25, %v174_v23  ;;  %v179_v27 = vrot.slane %v170_v25, %v178_v24  ;;  %p298_p2 = scmp.ne.s32.totalorder %s209_s12, %s297_s2  ;;  %p303_p4 = scmp.lt.s32.totalorder %s297_s2, %s297_s2 }
  0x30   :  { %p304_p5 = por %p303_p4, %p302_p3 }
  0x31   :  { %117 = vmatpush1.bf16.msra.mxu0 %v249_v7 }
  0x32   :  { %118 = vmatprep.subr.bf16.mxu0 %v250_v8  ;;  %p305_p6 = pnand %p304_p5, %p298_p2 }
  0x35   :  { %119 = vmatpush1.bf16.msra.mxu0 %v252_v9 }
  0x38   :  { %229 = vmatmul.mubr.msk.bf16.vlgmr.msra.gmra.mrb[0].mxu0 %vm49_vm0, %v59_v12 }
 0x10b   :  { %v146_v15 = vpop.f32.mrb[0].mxu0 }
 0x10c   :  { %v148_v17 = vpop.f32.mrb[1].mxu0  ;;  %v182_v29 = vadd.f32 %v175_v26, %v146_v15 }
 0x10d   :  { %v156_v19 = vadd.f32 %v148_v17, %v54_v14  ;;  %v150_v20 = vpop.f32.mrb[2].mxu0 }
 0x10e   :  { %v152_v21 = vpop.f32.mrb[3].mxu0  ;;  %v184_v32 = vadd.f32 %v175_v26, %v150_v20 }
 0x10f   :  { %160 = vst.msk [vmem:[#allocation2 + $0x8] sm:$0xff] %vm49_vm0, %v156_v19  ;;  %v158_v22 = vadd.f32 %v152_v21, %v56_v18 }
 0x111   :  { %162 = vst.msk [vmem:[#allocation2 + $0x18] sm:$0xff] %vm49_vm0, %v158_v22 }
 0x116   :  { %v167_v28 = vld [vmem:[#allocation2 + $0x8] sm:$0xff] }
 0x117   :  { %v183_v30 = vadd.f32 %v179_v27, %v167_v28 }
 0x118   :  { %v169_v31 = vld [vmem:[#allocation2 + $0x18] sm:$0xff] }
 0x119   :  { %v185_v33 = vadd.f32 %v179_v27, %v169_v31  ;;  %v232_v34 = vpack.c.bf16 %v183_v30, %v182_v29 }
 0x11b   :  { %v233_v35 = vpack.c.bf16 %v185_v33, %v184_v32  ;;  %201 = vst.msk [vmem:[#allocation8] sm:$0xff] %vm200_vm3, %v232_v34 }
 0x11d   :  { %202 = vst.msk [vmem:[#allocation8 + $0x8] sm:$0xff] %vm200_vm3, %v233_v35 }
 0x11e   :  { %308 = shalt.err (!%p305_p6)
}
 0x11f   :  { %s309_s15 = scalar_lea.hbm %s408_s3, 256 }
 0x120   :  { %p310_p7 = scmp.ne.s32.totalorder %s408_s3, %s309_s15  ;;  %p313_p8 = scmp.lt.u32.totalorder %s309_s15, %s408_s3 }
 0x122   :  { %p315_p9 = pnand %p313_p8, %p310_p7 }
 0x124   :  { %318 = shalt.err (!%p315_p9)
}
 0x125   :  { %214 = dma.vmem_to_hbm [thread:$0]  %s209_s12, 256, %s408_s3, [#allocation5], %s326_s22, %s326_s22, %s327_s23  }
 0x126   :  { %323 = dma.done.wait [#allocation5], 256  }
 0x127   :  { %324 = vsyncadd [#allocation5], 4294967040 }
 0x128   :  { %218 = vsyncpa [#allocation4], 1 }
 0x129   :  { %219 = vsyncpa [#allocation7], 1 }
 0x12a   :  { %220 = vsyncpa [#allocation5], 1 }

</bundles_post_ra>
